<compile_context>
chip_gen: v7x
topology: tpu7x:2x2x1
jax: 0.10.0
libtpu: 0.0.40
codegen_flags: <defaults>
</compile_context>

<pallas_src>
import functools

import jax
import jax.numpy as jnp
from jax.experimental import pallas as pl
from jax.experimental.pallas import tpu as pltpu

LANE = 128      # vreg lane width
SUBLANE = 8     # vreg sublane count


def _round_up(n, m):
    return ((n + m - 1) // m) * m


# ----------------------------------------------------------------------------
# Fused kernel: inner model (cond + uncond branches) + CFG blend + mask.
# One grid step = (batch b, row tile t).
# ----------------------------------------------------------------------------
def cfg_fused_kernel(x_ref, bias_ref, mask_ref, w1_ref, w2_ref, b2_ref, o_ref, *, s):
    # x may arrive f32 (aligned fast path) or bf16 (padded path); cast to the
    # MXU operand dtype in-kernel — the VPU cast hides under the matmul.
    x = x_ref[0].astype(w1_ref.dtype)                                   # [Tt, Dp]

    # Shared first matmul (computed ONCE for both CFG branches), f32 accumulate.
    base = jnp.dot(x, w1_ref[...], preferred_element_type=jnp.float32)  # [Tt, Hp]

    biases = bias_ref[0]                                                # [2, Hp] f32
    h_c = jnp.maximum(base + biases[0:1, :], 0.0)                       # cond branch
    h_u = jnp.maximum(base + biases[1:2, :], 0.0)                       # uncond branch

    # CFG blend moved before W2 (affine combination commutes with linear+bias).
    # 3-op form trims one VPU multiply per element; elementwise path stays f32.
    h = (h_u + s * (h_c - h_u)).astype(w2_ref.dtype)                    # [Tt, Hp] bf16

    out = jnp.dot(h, w2_ref[...], preferred_element_type=jnp.float32)   # [Tt, Dp]
    out = out + b2_ref[...]                                             # + [1, Dp]

    # mask_ref[0] is [Tt, 1]; broadcasts over lanes in the multiply.
    o_ref[0] = (out * mask_ref[0]).astype(o_ref.dtype)


# ----------------------------------------------------------------------------
# Wrapper: padding, bias precompute, BlockSpecs, pallas_call.
# ----------------------------------------------------------------------------
def timestep_embedding(t, dim):
    half = dim // 2
    freqs = jnp.exp(-jnp.log(10000.0) * jnp.arange(half, dtype=jnp.float32) / half)
    args = t.astype(jnp.float32)[:, None] * freqs[None, :]
    return jnp.concatenate([jnp.cos(args), jnp.sin(args)], axis=-1)  # [B, dim]


def classifier_free_sample(x, timesteps, cond, mask, params, cfg_scale, emb_dim,
                           out_dtype=jnp.bfloat16):
    """Mirrors ClassifierFreeSampleModel.forward.  x: [B,T,D], mask: [B,T]."""
    B, T, D = x.shape
    H = params["w1"].shape[1]

    D_pad = _round_up(D, LANE)
    H_pad = _round_up(H, LANE)
    # Bigger row tiles amortize the ~0.35us/step overhead and fill the MXU's M
    # dimension.  (On v6e/v7x a multiple of 256 is ideal when T allows.)
    T_tile = min(512, _round_up(T, SUBLANE))
    T_pad = _round_up(T, T_tile)

    # Per-batch conditioning biases (plain JAX, O(B*E*H), negligible):
    #   uncond branch has cond zeroed -> its cond@Wc term vanishes.
    temb = timestep_embedding(timesteps, emb_dim)                    # [B, E]
    bias_u = temb @ params["wt"] + params["b1"]                      # [B, H]
    bias_c = bias_u + cond @ params["wc"]                            # [B, H]
    biases = jnp.stack([bias_c, bias_u], axis=1)                     # [B, 2, H]
    biases_k = jnp.pad(biases, ((0, 0), (0, 0), (0, H_pad - H))).astype(jnp.float32)

    # x: avoid a wrapper-side HBM pass when already lane/sublane aligned (pass
    # f32 straight through, cast in-kernel); otherwise pad+cast in one fused op.
    if D_pad == D and T_pad == T:
        xk = x
    else:
        xk = jnp.pad(x, ((0, 0), (0, T_pad - T), (0, D_pad - D))).astype(jnp.bfloat16)

    w1k = jnp.pad(params["w1"], ((0, D_pad - D), (0, H_pad - H))).astype(jnp.bfloat16)
    w2k = jnp.pad(params["w2"], ((0, H_pad - H), (0, D_pad - D))).astype(jnp.bfloat16)
    b2k = jnp.pad(params["b2"], ((0, 0), (0, D_pad - D))).astype(jnp.float32)

    # Mask as a skinny (B, T_pad, 1) stream — no 128-lane broadcast in HBM.
    mask_k = jnp.pad(mask, ((0, 0), (0, T_pad - T)))[:, :, None].astype(jnp.float32)

    grid = (B, T_pad // T_tile)

    # W1/W2 have a constant index_map; for large models skip double-buffering
    # them so the resident-weight footprint stays within v7x's 64 MiB VMEM.
    weight_bytes = 2 * D_pad * H_pad * 2  # both weights, bf16
    if weight_bytes > (8 << 20):
        w1_spec = pl.BlockSpec((D_pad, H_pad), lambda b, t: (0, 0),
                               pipeline_mode=pl.Buffered(1))
        w2_spec = pl.BlockSpec((H_pad, D_pad), lambda b, t: (0, 0),
                               pipeline_mode=pl.Buffered(1))
    else:
        w1_spec = pl.BlockSpec((D_pad, H_pad), lambda b, t: (0, 0))
        w2_spec = pl.BlockSpec((H_pad, D_pad), lambda b, t: (0, 0))

    grid_spec = pltpu.PrefetchScalarGridSpec(
        num_scalar_prefetch=0,
        grid=grid,
        in_specs=[
            pl.BlockSpec((1, T_tile, D_pad), lambda b, t: (b, t, 0)),   # x tile
            pl.BlockSpec((1, 2, H_pad), lambda b, t: (b, 0, 0)),        # [bias_c; bias_u]
            pl.BlockSpec((1, T_tile, 1), lambda b, t: (b, t, 0)),       # mask (skinny)
            w1_spec,                                                     # W1 (resident)
            w2_spec,                                                     # W2 (resident)
            pl.BlockSpec((1, D_pad), lambda b, t: (0, 0)),               # b2
        ],
        out_specs=pl.BlockSpec((1, T_tile, D_pad), lambda b, t: (b, t, 0)),
    )

    flops = 4 * B * T_pad * D_pad * H_pad          # two MXU matmuls per row tile
    bytes_accessed = (B * T_pad * D_pad * xk.dtype.itemsize   # x
                      + 2 * D_pad * H_pad * 2                 # W1, W2 bf16
                      + B * 2 * H_pad * 4                     # biases f32
                      + B * T_pad * 4                         # mask f32 (1 lane)
                      + D_pad * 4                             # b2
                      + B * T_pad * D_pad * jnp.dtype(out_dtype).itemsize)  # output

    out = pl.pallas_call(
        functools.partial(cfg_fused_kernel, s=float(cfg_scale)),
        out_shape=jax.ShapeDtypeStruct((B, T_pad, D_pad), out_dtype),
        grid_spec=grid_spec,
        compiler_params=pltpu.CompilerParams(
            dimension_semantics=("parallel", "parallel")),
        cost_estimate=pl.CostEstimate(
            flops=flops, transcendentals=0, bytes_accessed=bytes_accessed),
    )(xk, biases_k, mask_k, w1k, w2k, b2k)

    # Free when no padding was applied; callers that can consume the padded
    # slab should do so to skip the extra HBM pass.
    return out[:, :T, :D]


# ----------------------------------------------------------------------------
# Pure-JAX f32 reference: literal translation of the PyTorch wrapper semantics
# (duplicate batch, zero cond, run model, blend).
# ----------------------------------------------------------------------------
def reference(x, timesteps, cond, mask, params, cfg_scale, emb_dim):
    B = x.shape[0]
    x2 = jnp.concatenate([x, x], axis=0)
    t2 = jnp.concatenate([timesteps, timesteps], axis=0)
    cond2 = jnp.concatenate([cond, jnp.zeros_like(cond)], axis=0)
    mask2 = jnp.concatenate([mask, mask], axis=0)
    temb2 = timestep_embedding(t2, emb_dim)
    h = (jnp.einsum("btd,dh->bth", x2, params["w1"])
         + (temb2 @ params["wt"])[:, None, :]
         + (cond2 @ params["wc"])[:, None, :]
         + params["b1"][None])
    h = jnp.maximum(h, 0.0)
    out = jnp.einsum("bth,hd->btd", h, params["w2"]) + params["b2"][None]
    out = out * mask2[:, :, None]
    return cfg_scale * out[:B] + (1.0 - cfg_scale) * out[B:]


if __name__ == "__main__":
    # NOTE: at these demo sizes the kernel is launch/overhead bound (T=8 rows
    # use only 8 of the MXU's 128/256 rows); the Pallas path is intended for
    # large-T inference where the tiling above pays off.
    B, T, D = 2, 8, 32          # batch, sequence, feature (x: [B, T, D])
    C, H, E = 16, 64, 32        # cond dim, hidden dim, timestep-embedding dim
    cfg_scale = 2.5

    key = jax.random.PRNGKey(0)
    kx, kc, kw1, kwt, kwc, kw2 = jax.random.split(key, 6)

    x = jax.random.normal(kx, (B, T, D), dtype=jnp.float32)
    timesteps = jnp.arange(B, dtype=jnp.float32) * 10.0 + 3.0
    cond = jax.random.normal(kc, (B, C), dtype=jnp.float32)
    mask = jnp.ones((B, T), dtype=jnp.float32).at[:, T // 2:].set(
        jnp.array([1.0, 0.0], dtype=jnp.float32)[:, None])  # some masked positions

    params = {
        "w1": jax.random.normal(kw1, (D, H), dtype=jnp.float32) * 0.05,
        "wt": jax.random.normal(kwt, (E, H), dtype=jnp.float32) * 0.05,
        "wc": jax.random.normal(kwc, (C, H), dtype=jnp.float32) * 0.05,
        "b1": jnp.zeros((1, H), dtype=jnp.float32),
        "w2": jax.random.normal(kw2, (H, D), dtype=jnp.float32) * 0.05,
        "b2": jnp.zeros((1, D), dtype=jnp.float32),
    }

    out = classifier_free_sample(x, timesteps, cond, mask, params, cfg_scale, E,
                                 out_dtype=jnp.bfloat16)
    out = jax.block_until_ready(out)

    ref = reference(x, timesteps, cond, mask, params, cfg_scale, E)
    assert out.shape == (B, T, D)
    # Tolerance accounts for bf16 MXU operands / bf16 output vs. f32 reference.
    assert jnp.allclose(out.astype(jnp.float32), ref, rtol=5e-2, atol=5e-2)

    print("KERNEL_OK")
</pallas_src>

<mosaic_0001>
module attributes {stable_mosaic.version = 11 : i64} {
  func.func @cfg_fused_kernel(%arg0: i32, %arg1: i32, %arg2: memref<1x8x128xbf16, #tpu.memory_space<vmem>>, %arg3: memref<1x2x128xf32, #tpu.memory_space<vmem>>, %arg4: memref<1x8x1xf32, #tpu.memory_space<vmem>>, %arg5: memref<128x128xbf16, #tpu.memory_space<vmem>>, %arg6: memref<128x128xbf16, #tpu.memory_space<vmem>>, %arg7: memref<1x128xf32, #tpu.memory_space<vmem>>, %arg8: memref<1x8x128xbf16, #tpu.memory_space<vmem>>) attributes {dimension_semantics = [#tpu.dimension_semantics<parallel>, #tpu.dimension_semantics<parallel>], iteration_bounds = array<i64: 2, 1>, scalar_prefetch = 0 : i64, scratch_operands = 0 : i64, tpu.core_type = #tpu.core_type<tc>, window_params = [{transform_indices = @transform_0, window_bounds = array<i64: 1, 8, 128>}, {transform_indices = @transform_1, window_bounds = array<i64: 1, 2, 128>}, {transform_indices = @transform_2, window_bounds = array<i64: 1, 8, 1>}, {pipeline_mode = #tpu.pipeline_mode<synchronous>, transform_indices = @transform_3, window_bounds = array<i64: 128, 128>}, {pipeline_mode = #tpu.pipeline_mode<synchronous>, transform_indices = @transform_4, window_bounds = array<i64: 128, 128>}, {pipeline_mode = #tpu.pipeline_mode<synchronous>, transform_indices = @transform_5, window_bounds = array<i64: 1, 128>}, {transform_indices = @transform_6, window_bounds = array<i64: 1, 8, 128>}]} {
    %c0 = arith.constant 0 : index
    %c0_0 = arith.constant 0 : index
    %c0_1 = arith.constant 0 : index
    %0 = vector.load %arg2[%c0, %c0_0, %c0_1] : memref<1x8x128xbf16, #tpu.memory_space<vmem>>, vector<1x8x128xbf16>
    %1 = vector.shape_cast %0 : vector<1x8x128xbf16> to vector<8x128xbf16>
    %c0_2 = arith.constant 0 : index
    %c0_3 = arith.constant 0 : index
    %2 = vector.load %arg5[%c0_2, %c0_3] : memref<128x128xbf16, #tpu.memory_space<vmem>>, vector<128x128xbf16>
    %cst = arith.constant dense<0.000000e+00> : vector<8x128xf32>
    %3 = tpu.matmul %1, %2, %cst {dimension_numbers = #tpu.dot_dimension_numbers<[1], [0], [0], [1], [0, 0, 1, 1], [], []>} : vector<8x128xbf16>, vector<128x128xbf16>, vector<8x128xf32> -> vector<8x128xf32>
    %c0_4 = arith.constant 0 : index
    %c0_5 = arith.constant 0 : index
    %c0_6 = arith.constant 0 : index
    %4 = vector.load %arg3[%c0_4, %c0_5, %c0_6] : memref<1x2x128xf32, #tpu.memory_space<vmem>>, vector<1x2x128xf32>
    %5 = vector.shape_cast %4 : vector<1x2x128xf32> to vector<2x128xf32>
    %6 = vector.extract_strided_slice %5 {offsets = [0, 0], sizes = [1, 128], strides = [1, 1]} : vector<2x128xf32> to vector<1x128xf32>
    %7 = vector.broadcast %6 : vector<1x128xf32> to vector<8x128xf32>
    %8 = arith.addf %3, %7 : vector<8x128xf32>
    %cst_7 = arith.constant 0.000000e+00 : f32
    %9 = vector.broadcast %cst_7 : f32 to vector<8x128xf32>
    %10 = arith.maximumf %8, %9 : vector<8x128xf32>
    %11 = vector.extract_strided_slice %5 {offsets = [1, 0], sizes = [1, 128], strides = [1, 1]} : vector<2x128xf32> to vector<1x128xf32>
    %12 = vector.broadcast %11 : vector<1x128xf32> to vector<8x128xf32>
    %13 = arith.addf %3, %12 : vector<8x128xf32>
    %cst_8 = arith.constant 0.000000e+00 : f32
    %14 = vector.broadcast %cst_8 : f32 to vector<8x128xf32>
    %15 = arith.maximumf %13, %14 : vector<8x128xf32>
    %16 = arith.subf %10, %15 : vector<8x128xf32>
    %cst_9 = arith.constant 2.500000e+00 : f32
    %17 = vector.broadcast %cst_9 : f32 to vector<8x128xf32>
    %18 = arith.mulf %17, %16 : vector<8x128xf32>
    %19 = arith.addf %15, %18 : vector<8x128xf32>
    %20 = arith.truncf %19 : vector<8x128xf32> to vector<8x128xbf16>
    %c0_10 = arith.constant 0 : index
    %c0_11 = arith.constant 0 : index
    %21 = vector.load %arg6[%c0_10, %c0_11] : memref<128x128xbf16, #tpu.memory_space<vmem>>, vector<128x128xbf16>
    %cst_12 = arith.constant dense<0.000000e+00> : vector<8x128xf32>
    %22 = tpu.matmul %20, %21, %cst_12 {dimension_numbers = #tpu.dot_dimension_numbers<[1], [0], [0], [1], [0, 0, 1, 1], [], []>} : vector<8x128xbf16>, vector<128x128xbf16>, vector<8x128xf32> -> vector<8x128xf32>
    %c0_13 = arith.constant 0 : index
    %c0_14 = arith.constant 0 : index
    %23 = vector.load %arg7[%c0_13, %c0_14] : memref<1x128xf32, #tpu.memory_space<vmem>>, vector<1x128xf32>
    %24 = vector.broadcast %23 : vector<1x128xf32> to vector<8x128xf32>
    %25 = arith.addf %22, %24 : vector<8x128xf32>
    %c0_15 = arith.constant 0 : index
    %c0_16 = arith.constant 0 : index
    %c0_17 = arith.constant 0 : index
    %26 = vector.load %arg4[%c0_15, %c0_16, %c0_17] : memref<1x8x1xf32, #tpu.memory_space<vmem>>, vector<1x8x1xf32>
    %27 = vector.shape_cast %26 : vector<1x8x1xf32> to vector<8x1xf32>
    %28 = vector.broadcast %27 : vector<8x1xf32> to vector<8x128xf32>
    %29 = arith.mulf %25, %28 : vector<8x128xf32>
    %30 = arith.truncf %29 : vector<8x128xf32> to vector<8x128xbf16>
    %c0_18 = arith.constant 0 : index
    %c0_19 = arith.constant 0 : index
    %c0_20 = arith.constant 0 : index
    %31 = vector.load %arg8[%c0_18, %c0_19, %c0_20] : memref<1x8x128xbf16, #tpu.memory_space<vmem>>, vector<1x8x128xbf16>
    %32 = vector.shape_cast %31 : vector<1x8x128xbf16> to vector<8x128xbf16>
    %33 = vector.shape_cast %30 : vector<8x128xbf16> to vector<1x8x128xbf16>
    tpu.vector_store %arg8[%c0_18, %c0_19, %c0_20], %33 {strides = array<i32>} : memref<1x8x128xbf16, #tpu.memory_space<vmem>>, vector<1x8x128xbf16>,
    return
  }
  func.func @transform_0(%arg0: i32, %arg1: i32) -> (i32, i32, i32) {
    %c0_i32 = arith.constant 0 : i32
    %c0_i32_0 = arith.constant 0 : i32
    return %arg0, %arg1, %c0_i32 : i32, i32, i32
  }
  func.func @transform_1(%arg0: i32, %arg1: i32) -> (i32, i32, i32) {
    %c0_i32 = arith.constant 0 : i32
    %c0_i32_0 = arith.constant 0 : i32
    %c0_i32_1 = arith.constant 0 : i32
    return %arg0, %c0_i32, %c0_i32_0 : i32, i32, i32
  }
  func.func @transform_2(%arg0: i32, %arg1: i32) -> (i32, i32, i32) {
    %c0_i32 = arith.constant 0 : i32
    %c0_i32_0 = arith.constant 0 : i32
    return %arg0, %arg1, %c0_i32 : i32, i32, i32
  }
  func.func @transform_3(%arg0: i32, %arg1: i32) -> (i32, i32) {
    %c0_i32 = arith.constant 0 : i32
    %c0_i32_0 = arith.constant 0 : i32
    %c0_i32_1 = arith.constant 0 : i32
    return %c0_i32, %c0_i32_0 : i32, i32
  }
  func.func @transform_4(%arg0: i32, %arg1: i32) -> (i32, i32) {
    %c0_i32 = arith.constant 0 : i32
    %c0_i32_0 = arith.constant 0 : i32
    %c0_i32_1 = arith.constant 0 : i32
    return %c0_i32, %c0_i32_0 : i32, i32
  }
  func.func @transform_5(%arg0: i32, %arg1: i32) -> (i32, i32) {
    %c0_i32 = arith.constant 0 : i32
    %c0_i32_0 = arith.constant 0 : i32
    %c0_i32_1 = arith.constant 0 : i32
    return %c0_i32, %c0_i32_0 : i32, i32
  }
  func.func @transform_6(%arg0: i32, %arg1: i32) -> (i32, i32, i32) {
    %c0_i32 = arith.constant 0 : i32
    %c0_i32_0 = arith.constant 0 : i32
    return %arg0, %arg1, %c0_i32 : i32, i32, i32
  }
}

</mosaic_0001>

<bundles_post_ra>
// kernel: tpu_custom_call.1
= control target key start
LH: loop header
LB: loop body
LE: loop exit
PB: predicated region body
PF: predicated region fallthrough
CT: control target
= control target key end

     0   :  { %11 = vsyncpa [#allocation3], 0  ;;  %s1303_s0 = inlined_call_operand.vmem [shape: bf16[2,8,128], index: 0, kind: input, shape index: {}]   ;;  %s1304_s1 = inlined_call_operand.vmem [shape: f32[2,2,128], index: 1, kind: input, shape index: {}]   ;;  %s1305_s2 = inlined_call_operand.vmem [shape: f32[2,8,1], index: 2, kind: input, shape index: {}]   ;;  %s1306_s3 = inlined_call_operand.hbm [shape: bf16[128,128], index: 3, kind: input, shape index: {}]   ;;  %s1307_s4 = inlined_call_operand.hbm [shape: bf16[128,128], index: 4, kind: input, shape index: {}]   ;;  %s1308_s5 = inlined_call_operand.vmem [shape: f32[1,128], index: 5, kind: input, shape index: {}]   ;;  %s1309_s6 = inlined_call_operand.hbm [shape: bf16[2,8,128], index: 6, kind: output, shape index: {}]  }
   0x1   :  { %12 = vsyncpa [#allocation6], 0 }
   0x2   :  { %13 = vsyncpa [#allocation4], 0 }
   0x3   :  { %15 = vsyncpa [#allocation4 + $0x1], 0  ;;  %s1102_s21 = smov 0   ;;  %s1104_s22 = smov 0  }
   0x4   :  { %s1106_s23 = smov 0   ;;  %s1108_s24 = smov 0  }
   0x5   :  { %s1110_s25 = smov 0   ;;  %s1112_s26 = smov 0  }
   0x6 LB: > { %1316 = sst [smem:[#allocation11_spill]] %s1053_s25  ;;  %s725_s27 = sadd.s32 4294967295, %s1057_s26   ;;  %s1057_s26 = sphi %s1112_s26, %s21_s26   ;;  %s1053_s25 = sphi %s1110_s25, %s1328_s25   ;;  %s1049_s24 = sphi %s1108_s24, %s1327_s24   ;;  %s1045_s23 = sphi %s1106_s23, %s1331_s23   ;;  %s1041_s22 = sphi %s1104_s22, %s1330_s22   ;;  %s1037_s21 = sphi %s1102_s21, %s1329_s21  }
   0x7   : > { %s726_s28 = sadd.s32 4294967294, %s1057_s26   ;;  %s33_s29 = sadd.s32 1, %s1053_s25 }
   0x8   : > { %s187_s30 = sadd.s32 1, %s1045_s23  ;;  %p35_p0 = scmp.ge.s32.totalorder %s33_s29, 2 }
   0x9   : > { %p197_p1 = scmp.ne.s32.totalorder %s1045_s23, %s1041_s22  ;;  %p198_p2 = scmp.eq.s32.totalorder %s725_s27, 1 }
   0xa   : > { %p203_p3 = scmp.ne.s32.totalorder %s1041_s22, %s1037_s21  ;;  %s1333_s29 = smov (%p35_p0, %s33_s29), 0 }
   0xb   : > { %1317 = sst [smem:[#allocation12_spill]] %s1333_s29  ;;  %p1142_p4 = por %p198_p2, %p197_p1 }
   0xc   : > { %p204_p5 = scmp.eq.s32.totalorder %s726_s28, 1  ;;  %s182_s8 = ssub.s32 %s1053_s25, %s1333_s29 }
   0xd   : > { %s1318_s7 = scalar_select %p1142_p4, 1, 0 }
   0xe   : > { %p727_p6 = scmp.ge.s32.totalorder %s1057_s26, 1  ;;  %p185_p7 = scmp.eq.s32.totalorder %s182_s8, 0 }
   0xf   : > { %p1149_p8 = por %p204_p5, %p203_p3  ;;  %p211_p9 = scmp.lt.s32.totalorder %s1057_s26, 3 }
  0x10   : > { %s1155_s10 = scalar_select %p185_p7, %s1045_s23, %s187_s30  }
  0x11   : > { %s1319_s9 = scalar_select %p1149_p8, 1, 0 }
  0x12   : > { %p1157_p10 = pnand %p727_p6, %p211_p9  ;;  %p1161_p11 = scmp.eq.s32.totalorder %s725_s27, 0 }
  0x13   : > { %s1059_s13 = smov [#allocation2]   ;;  %s1060_s16 = smov [#allocation5]  }
  0x14   : > { %s1320_s11 = scalar_select %p1157_p10, 1, 0 }
  0x15   : > { %s1321_s12 = scalar_select %p1161_p11, 1, 0 }
  0x16   : > { %p827_p12 = pneg %p1157_p10  ;;  %s223_s14 = sshll.u32 %s1059_s13, 4  ;;  %s224_s14 = int_to_ptr.vmem [resolvable:$true] %s223_s14 }
  0x17   : > { %s236_s17 = sshll.u32 %s1060_s16, 4  ;;  %s915_s20 = scalar_lea.hbm %s1306_s3, 1024  ;;  %s1173_s17 = int_to_ptr.vmem [resolvable:$true] %s236_s17 }
  0x18   : > { %p1169_p13 = pnand %p1161_p11, %p827_p12  ;;  %p916_p0 = scmp.ne.s32.totalorder %s1306_s3, %s915_s20 }
  0x19   : > { %p922_p5 = scmp.lt.u32.totalorder %s915_s20, %s1306_s3 }
  0x1a   : > { %p917_p1 = pneg %p1169_p13 }
  0x1c   : > { %p918_p2 = pnand %p917_p1, %p916_p0 }
  0x1e   : > { %p919_p3 = pneg %p918_p2 }
  0x20   : > { %p924_p6 = pnand %p922_p5, %p919_p3 }
  0x22   : > { %927 = shalt.err (!%p924_p6)
}
  0x23   : > { %s928_s13 = scalar_lea.vmem %s224_s14, 1024  ;;  %p936_p8 = scmp.lt.s32.totalorder %s224_s14, %s224_s14 }
  0x24   : > { %p929_p7 = scmp.ne.s32.totalorder %s224_s14, %s928_s13  ;;  %p937_p4 = scmp.lt.s32.totalorder %s928_s13, %s928_s13 }
  0x26   : > { %p931_p9 = pnand %p929_p7, %p917_p1  ;;  %p938_p11 = por %p937_p4, %p936_p8 }
  0x28   : > { %p932_p12 = pneg %p931_p9 }
  0x2a   : > { %p939_p10 = pnand %p938_p11, %p932_p12 }
  0x2c   : > { %942 = shalt.err (!%p939_p10)
}
  0x2d   : > { %s1061_s16 = smov 64   ;;  %s1062_s18 = smov 4  }
  0x2e   : > { %830 = dma.hbm_to_vmem [thread:$0]  (!%p1169_p13), %s1306_s3, 1024, %s224_s14, [#allocation3], %s1061_s16, %s1061_s16, %s1062_s18  }
  0x2f   : > { %s943_s30 = scalar_lea.hbm %s1307_s4, 1024 }
  0x30   : > { %p944_p0 = scmp.ne.s32.totalorder %s1307_s4, %s943_s30  ;;  %p950_p10 = scmp.lt.u32.totalorder %s943_s30, %s1307_s4 }
  0x32   : > { %p946_p4 = pnand %p944_p0, %p917_p1 }
  0x34   : > { %p947_p8 = pneg %p946_p4 }
  0x36   : > { %p952_p11 = pnand %p950_p10, %p947_p8 }
  0x38   : > { %955 = shalt.err (!%p952_p11)
}
  0x39   : > { %s956_s14 = scalar_lea.vmem %s1173_s17, 1024  ;;  %p964_p6 = scmp.lt.s32.totalorder %s1173_s17, %s1173_s17 }
  0x3a   : > { %p957_p2 = scmp.ne.s32.totalorder %s1173_s17, %s956_s14  ;;  %p965_p7 = scmp.lt.s32.totalorder %s956_s14, %s956_s14 }
  0x3c   : > { %p959_p3 = pnand %p957_p2, %p917_p1  ;;  %p966_p9 = por %p965_p7, %p964_p6 }
  0x3e   : > { %p960_p5 = pneg %p959_p3 }
  0x40   : > { %p967_p12 = pnand %p966_p9, %p960_p5 }
  0x42   : > { %970 = shalt.err (!%p967_p12)
}
  0x43   : > { %833 = dma.hbm_to_vmem [thread:$0]  (!%p1169_p13), %s1307_s4, 1024, %s1173_s17, [#allocation6], %s1061_s16, %s1061_s16, %s1062_s18  }
  0x44   : > { %p1323_p0 = scmp.ne.s32.totalorder %s1320_s11, 0 }
  0x45   : > { %p1324_p4 = scmp.ne.s32.totalorder (!%p1323_p0), %s1321_s12, 0 }
  0x46   : > { %282 = sbr.rel (%p1323_p0) target bundleno = 570 (0x23a), region = 44 }
  0x4d   : > { %1024 = dma.done.wait (%p1324_p4), [#allocation3], 1024  }
  0x4e   : > { %1026 = vsyncadd (%p1324_p4), [#allocation3], 4294966272 }
  0x4f   : > { %1028 = dma.done.wait (%p1324_p4), [#allocation6], 1024  }
  0x50   : > { %1030 = vsyncadd (%p1324_p4), [#allocation6], 4294966272  ;;  %v1063_v0 = vmov 0.0   ;;  %vm1064_vm0 = vmmov 0   ;;  %v899_v1 = vld [vmem:[#allocation2] sm:$0xff]   ;;  %v900_v2 = vld [vmem:[#allocation2 + $0x8] sm:$0xff]   ;;  %v454_v20 = vlaneseq }
  0x51   : > { %777 = vmatprep.subr.bf16.mxu0 %v1063_v0  ;;  %793 = vmatprep.mubr.msk.bf16.mxu0 %vm1064_vm0, %v1063_v0  ;;  %v901_v3 = vld [vmem:[#allocation2 + $0x10] sm:$0xff]   ;;  %v907_v4 = vld [vmem:[#allocation5] sm:$0xff]   ;;  %v902_v5 = vld [vmem:[#allocation2 + $0x18] sm:$0xff]   ;;  %p329_p13 = scmp.lt.s32.totalorder %s1049_s24, 1  ;;  %v1065_v18 = vmov 0   ;;  %s326_s14 = sand.u32 1, %s1041_s22  }
  0x52   : > { %797 = vmatprep.subr.bf16.mxu1 %v1063_v0  ;;  %813 = vmatprep.mubr.msk.bf16.mxu1 %vm1064_vm0, %v1063_v0  ;;  %v908_v6 = vld [vmem:[#allocation5 + $0x8] sm:$0xff]   ;;  %v903_v7 = vld [vmem:[#allocation2 + $0x20] sm:$0xff]   ;;  %v909_v8 = vld [vmem:[#allocation5 + $0x10] sm:$0xff]   ;;  %v455_v21 = vshrl.u32 %v454_v20, 7  ;;  %s734_s25 = sshll.u32 %s326_s14, 2  ;;  %s591_s20 = scalar_lea.sflag [#allocation4], %s326_s14 }
  0x53   : > { %778 = vmatpush3.bf16.msra.mxu0 %v899_v1  ;;  %798 = vmatpush3.bf16.msra.mxu1 %v907_v4  ;;  %v904_v9 = vld [vmem:[#allocation2 + $0x28] sm:$0xff]   ;;  %v910_v10 = vld [vmem:[#allocation5 + $0x18] sm:$0xff]   ;;  %s1234_s11 = scalar_select %p329_p13, %s1049_s24, 1  ;;  %v905_v11 = vld [vmem:[#allocation2 + $0x30] sm:$0xff]  }
  0x54   : > { %779 = vmatprep.subr.bf16.mxu0 %v1063_v0  ;;  %799 = vmatprep.subr.bf16.mxu1 %v1063_v0  ;;  %v911_v12 = vld [vmem:[#allocation5 + $0x20] sm:$0xff]   ;;  %v906_v13 = vld [vmem:[#allocation2 + $0x38] sm:$0xff]   ;;  %v912_v15 = vld [vmem:[#allocation5 + $0x28] sm:$0xff]   ;;  %v456_v22 = vsub.s32 0, %v455_v21  ;;  %v462_v23 = vsub.s32 1, %v455_v21  ;;  %s328_s15 = scalar_lea.vmem [#allocation7], %s734_s25 }
  0x55   : > { %s735_s12 = sshll.u32 %s1234_s11, 2  ;;  %v913_v16 = vld [vmem:[#allocation5 + $0x30] sm:$0xff]   ;;  %v914_v17 = vld [vmem:[#allocation5 + $0x38] sm:$0xff]   ;;  %s737_s18 = sshll.u32 %s1234_s11, 3  ;;  %898 = vset.pattern.permute.xlu0 %v1065_v18  ;;  %v746_v39 = vld [vmem:[%s1308_s5] ss:$0 sm:$0xff] }
  0x56   : > { %s335_s16 = scalar_lea.vmem %s1303_s0, %s735_s12  ;;  %s346_s27 = scalar_lea.vmem %s1305_s2, %s737_s18 }
  0x57   : > { %780 = vmatpush3.bf16.msra.mxu0 %v900_v2  ;;  %800 = vmatpush3.bf16.msra.mxu1 %v908_v6  ;;  %v348_v14 = vld [vmem:[%s335_s16] sm:$0xf]  ;;  %s736_s28 = sshll.u32 %s1234_s11, 1  ;;  %s756_s12 = sshll.u32 %s1049_s24, 6 }
  0x58   : > { %781 = vmatprep.subr.bf16.mxu0 %v1063_v0  ;;  %801 = vmatprep.subr.bf16.mxu1 %v1063_v0  ;;  %v581_v19 = vld [vmem:[%s346_s27] sm:$0xff]  ;;  %s339_s13 = scalar_lea.vmem %s1304_s1, %s736_s28  ;;  %s605_s17 = sshll.u32 %s328_s15, 4  ;;  %s1258_s17 = int_to_ptr.vmem [resolvable:$true] %s605_s17 }
  0x59   : > { %584 = vperm.xlu0 %898, %v581_v19   ;;  %v453_v24 = vld [vmem:[%s339_s13] sm:$0x3]  ;;  %s1256_s19 = scalar_lea.hbm %s1309_s6, %s756_s12  ;;  %s971_s27 = scalar_lea.vmem %s1258_s17, 64 }
  0x5a   : > { %v457_v25 = vrot.slane %v453_v24, %v456_v22  ;;  %v463_v26 = vrot.slane %v453_v24, %v462_v23  ;;  %p972_p1 = scmp.ne.s32.totalorder %s1258_s17, %s971_s27  ;;  %p1325_p8 = scmp.ne.s32.totalorder %s1318_s7, 0 }
  0x5b   : > { %782 = vmatpush3.bf16.msra.mxu0 %v901_v3  ;;  %802 = vmatpush3.bf16.msra.mxu1 %v909_v8  ;;  %s1066_s24 = smov [#allocation7]  }
  0x5c   : > { %783 = vmatprep.subr.bf16.mxu0 %v1063_v0  ;;  %803 = vmatprep.subr.bf16.mxu1 %v1063_v0  ;;  %p973_p10 = pnand %p972_p1, %p1325_p8  ;;  %s975_s28 = sshll.u32 %s1066_s24, 4  ;;  %s976_s28 = int_to_ptr.vmem [resolvable:$false] %s975_s28 }
  0x5d   : > { %s977_s30 = scalar_lea.vmem %s976_s28, 128  ;;  %p978_p2 = scmp.lt.s32.totalorder %s1258_s17, %s976_s28 }
  0x5e   : > { %p974_p11 = pneg %p973_p10  ;;  %p979_p3 = scmp.lt.s32.totalorder %s977_s30, %s971_s27 }
  0x5f   : > { %784 = vmatpush3.bf16.msra.mxu0 %v902_v5  ;;  %804 = vmatpush3.bf16.msra.mxu1 %v910_v10 }
  0x60   : > { %785 = vmatprep.subr.bf16.mxu0 %v1063_v0  ;;  %805 = vmatprep.subr.bf16.mxu1 %v1063_v0  ;;  %p980_p5 = por %p979_p3, %p978_p2 }
  0x62   : > { %p981_p6 = pnand %p980_p5, %p974_p11 }
  0x63   : > { %786 = vmatpush3.bf16.msra.mxu0 %v903_v7  ;;  %806 = vmatpush3.bf16.msra.mxu1 %v911_v12 }
  0x64   : > { %787 = vmatprep.subr.bf16.mxu0 %v1063_v0  ;;  %807 = vmatprep.subr.bf16.mxu1 %v1063_v0 }
  0x67   : > { %788 = vmatpush3.bf16.msra.mxu0 %v904_v9  ;;  %808 = vmatpush3.bf16.msra.mxu1 %v912_v15 }
  0x68   : > { %789 = vmatprep.subr.bf16.mxu0 %v1063_v0  ;;  %809 = vmatprep.subr.bf16.mxu1 %v1063_v0 }
  0x6b   : > { %790 = vmatpush3.bf16.msra.mxu0 %v905_v11  ;;  %810 = vmatpush3.bf16.msra.mxu1 %v913_v16 }
  0x6c   : > { %791 = vmatprep.subr.bf16.mxu0 %v1063_v0  ;;  %811 = vmatprep.subr.bf16.mxu1 %v1063_v0 }
  0x6f   : > { %792 = vmatpush3.bf16.msra.mxu0 %v906_v13  ;;  %812 = vmatpush3.bf16.msra.mxu1 %v914_v17 }
  0x72   : > { %794 = vmatmul.mubr.bf16.vlgmr.msra.gmra.mrb[0].mxu0 %v348_v14 }
  0xd8   : > { %v585_v41 = vpop.permute.xlu0 %584 }
 0x145   : > { %v447_v27 = vpop.f32.mrb[0].mxu0 }
 0x146   : > { %v458_v28 = vadd.f32 %v457_v25, %v447_v27  ;;  %v464_v29 = vadd.f32 %v463_v26, %v447_v27  ;;  %v795_v30 = vpop.f32.mrb[1].mxu0 }
 0x147   : > { %v450_v31 = vpop.f32.mrb[2].mxu0 }
 0x148   : > { %v459_v32 = vmax.f32 %v458_v28, 0.0  ;;  %v465_v33 = vmax.f32 %v464_v29, 0.0  ;;  %v796_v34 = vpop.f32.mrb[3].mxu0 }
 0x14a   : > { %v466_v35 = vsub.f32 %v459_v32, %v465_v33 }
 0x14c   : > { %v467_v36 = vmul.f32 2.5, %v466_v35 }
 0x14e   : > { %v468_v37 = vadd.f32 %v467_v36, %v465_v33 }
 0x150   : > { %v469_v38 = vpack.c.bf16 %v468_v37, %v468_v37 }
 0x152   : > { %814 = vmatmul.mubr.bf16.vlgmr.msra.gmra.mrb[0].mxu1 %v469_v38 }
 0x225   : > { %v575_v40 = vpop.f32.mrb[0].mxu1 }
 0x226   : > { %v576_v42 = vadd.f32 %v746_v39, %v575_v40  ;;  %v815_v43 = vpop.f32.mrb[1].mxu1 }
 0x227   : > { %v578_v44 = vpop.f32.mrb[2].mxu1 }
 0x228   : > { %v587_v45 = vmul.f32 %v585_v41, %v576_v42  ;;  %v816_v46 = vpop.f32.mrb[3].mxu1 }
 0x22a   : > { %v588_v47 = vpack.c.bf16 %v587_v45, %v587_v45 }
 0x22c   : > { %589 = vst [vmem:[%s328_s15] sm:$0xf] %v588_v47 }
 0x22d   : > { %984 = shalt.err (!%p981_p6)
}
 0x22e   : > { %s985_s8 = scalar_lea.hbm %s1256_s19, 64  ;;  %s989_s25 = scalar_lea.hbm %s1309_s6, 128 }
 0x22f   : > { %p986_p7 = scmp.ne.s32.totalorder %s1256_s19, %s985_s8  ;;  %p990_p0 = scmp.lt.u32.totalorder %s1256_s19, %s1309_s6 }
 0x230   : > { %p991_p4 = scmp.lt.u32.totalorder %s989_s25, %s985_s8  ;;  %p993_p1 = scmp.lt.u32.totalorder %s985_s8, %s1256_s19 }
 0x231   : > { %p987_p9 = pnand %p986_p7, %p1325_p8 }
 0x232   : > { %p992_p13 = por %p991_p4, %p990_p0 }
 0x233   : > { %p988_p12 = pneg %p987_p9 }
 0x234   : > { %p994_p10 = por %p993_p1, %p992_p13 }
 0x236   : > { %p995_p11 = pnand %p994_p10, %p988_p12 }
 0x238   : > { %998 = shalt.err (!%p995_p11)
}
 0x239   : > { %825 = dma.vmem_to_hbm [thread:$0]  (%p1325_p8), %s1258_s17, 64, %s1256_s19, %s591_s20  }
 0x23a PF: > { %p842_p2 = scmp.ge.s32.totalorder %s1057_s26, 2  ;;  %s617_s12 = sand.u32 1, %s1037_s21  }
 0x23b   : > { %p1326_p3 = scmp.ne.s32.totalorder %s1319_s9, 0  ;;  %s618_s15 = scalar_lea.sflag [#allocation4], %s617_s12 }
 0x23d   : > { %p835_p5 = pnand %p842_p2, %p1326_p3 }
 0x23f   : > { %1032 = dma.done.wait (!%p835_p5), %s618_s15, 64  }
 0x240   : > { %1034 = vsyncadd (!%p835_p5), %s618_s15, 4294967232  ;;  %s21_s26 = sadd.s32 1, %s1057_s26   ;;  %s1327_s24 = sld [smem:[#allocation11_spill]] }
 0x241   : > { %p18_p6 = scmp.ge.s32.totalorder %s21_s26, 4   ;;  %s1328_s25 = sld [smem:[#allocation12_spill]] }
 0x242   : > { %s1329_s21 = smov %s1041_s22  ;;  %s1330_s22 = smov %s1045_s23 }
 0x243   : > { %s1331_s23 = smov %s1155_s10  ;;  %20 = sbr.rel (!%p18_p6) target bundleno = 6 (0x6), region = 94 }
 0x24a   :  { %623 = vsyncpa [#allocation3], 1 }
 0x24b   :  { %625 = vsyncpa [#allocation3 + $0x1], 1 }
 0x24c   :  { %626 = vsyncpa [#allocation6], 1 }
 0x24d   :  { %627 = vsyncpa [#allocation4], 1 }
 0x24e   :  { %629 = vsyncpa [#allocation4 + $0x1], 1 }

</bundles_post_ra>
